<compile_context>
chip_gen: v6e
topology: v6e:2x2x1
jax: 0.10.0
libtpu: 0.0.40
codegen_flags: <defaults>
</compile_context>

<pallas_src>
import jax
import jax.numpy as jnp
from jax import lax
from jax.experimental import pallas as pl
from jax.experimental.pallas import tpu as pltpu


def _round_up(x: int, m: int) -> int:
    return ((x + m - 1) // m) * m


def _make_ce_label_smooth_kernel(num_classes: int, epsilon: float):
    keep = 1.0 - float(epsilon)
    smooth = float(epsilon) / float(num_classes)
    c_f = float(num_classes)

    def kernel(logits_ref, targets_ref, out_ref):
        x = logits_ref[...].astype(jnp.float32)          # (TILE_B, C)
        t = targets_ref[...]                             # (TILE_B, 1) int32

        # Numerically stable log-softmax pieces (never materialize log_probs).
        m = jnp.max(x, axis=1, keepdims=True)            # (TILE_B, 1)
        s = x - m                                        # (TILE_B, C)
        lse = jnp.log(jnp.sum(jnp.exp(s), axis=1, keepdims=True))  # (TILE_B, 1)

        # Gather s at the target class via a select feeding a row reduction
        # (TPU requires >=2D iota; select avoids int->float cast + multiply).
        class_ids = lax.broadcasted_iota(jnp.int32, s.shape, 1)     # (TILE_B, C)
        s_t = jnp.sum(jnp.where(class_ids == t, s, 0.0),
                      axis=1, keepdims=True)                        # (TILE_B, 1)
        s_sum = jnp.sum(s, axis=1, keepdims=True)                   # (TILE_B, 1)

        # -sum(((1-eps)*onehot + eps/K) * (s - lse))
        #   = -(1-eps)*(s_t - lse) - (eps/K)*(sum(s) - C*lse)
        loss = -keep * (s_t - lse) - smooth * (s_sum - c_f * lse)   # (TILE_B, 1)
        out_ref[...] = loss.astype(jnp.float32)

    return kernel


def cross_entropy_label_smooth(inputs: jax.Array,
                               targets: jax.Array,
                               num_classes: int,
                               epsilon: float = 0.1,
                               reduction: bool = True,
                               tile_b: int = 512) -> jax.Array:
    """Matches CrossEntropyLabelSmooth(num_classes, epsilon).forward.

    inputs: (B, C) logits (f32 or bf16), targets: (B,) int class labels.
    reduction=True -> scalar mean loss; reduction=False -> (B,) per-sample loss.
    """
    B, C = inputs.shape
    assert C == num_classes

    # Batch tile: multiple of 8 sublanes, capped by tile_b and padded batch.
    TILE_B = _round_up(min(tile_b, _round_up(B, 8)), 8)
    B_pad = _round_up(B, TILE_B)
    num_tiles = B_pad // TILE_B

    logits = inputs
    targets_2d = targets.astype(jnp.int32).reshape(B, 1)
    if B_pad != B:
        # Padded rows are sliced off before the mean; values are irrelevant.
        logits = jnp.pad(logits, ((0, B_pad - B), (0, 0)))
        targets_2d = jnp.pad(targets_2d, ((0, B_pad - B), (0, 0)))

    in_bytes_per_buf = TILE_B * C * logits.dtype.itemsize + TILE_B * 4
    out_bytes_per_buf = TILE_B * 4
    # Double-buffered inputs + outputs, plus headroom; cap at 64 MiB (v7x-safe).
    vmem_limit = int(min(64 << 20,
                         max(32 << 20, 4 * (in_bytes_per_buf + out_bytes_per_buf))))

    kernel = _make_ce_label_smooth_kernel(num_classes, epsilon)

    per_sample = pl.pallas_call(
        kernel,
        out_shape=jax.ShapeDtypeStruct((B_pad, 1), jnp.float32),
        grid_spec=pltpu.PrefetchScalarGridSpec(
            num_scalar_prefetch=0,
            grid=(num_tiles,),
            in_specs=[
                pl.BlockSpec((TILE_B, C), lambda i: (i, 0)),
                pl.BlockSpec((TILE_B, 1), lambda i: (i, 0)),
            ],
            out_specs=pl.BlockSpec((TILE_B, 1), lambda i: (i, 0)),
        ),
        compiler_params=pltpu.CompilerParams(
            dimension_semantics=("parallel",),
            vmem_limit_bytes=vmem_limit,
        ),
        cost_estimate=pl.CostEstimate(
            flops=6 * B_pad * C,
            transcendentals=B_pad * C,
            bytes_accessed=B_pad * C * logits.dtype.itemsize + 2 * B_pad * 4,
        ),
    )(logits, targets_2d)

    per_sample = per_sample[:B, 0]
    if reduction:
        return jnp.sum(per_sample) / jnp.float32(B)
    return per_sample


def _reference(inputs, targets, num_classes, epsilon=0.1):
    log_probs = jax.nn.log_softmax(inputs.astype(jnp.float32), axis=1)
    one_hot = jax.nn.one_hot(targets, num_classes, dtype=jnp.float32)
    smoothed = (1.0 - epsilon) * one_hot + epsilon / num_classes
    loss = jnp.sum(-smoothed * log_probs, axis=1)
    return jnp.mean(loss)


if __name__ == "__main__":
    key = jax.random.PRNGKey(0)
    k1, k2 = jax.random.split(key)

    B, NUM_CLASSES = 8, 32
    EPSILON = 0.1

    logits = jax.random.normal(k1, (B, NUM_CLASSES), dtype=jnp.float32)
    targets = jax.random.randint(k2, (B,), 0, NUM_CLASSES, dtype=jnp.int32)

    loss = cross_entropy_label_smooth(logits, targets, NUM_CLASSES, EPSILON)
    loss = jax.block_until_ready(loss)

    ref = _reference(logits, targets, NUM_CLASSES, EPSILON)
    assert jnp.allclose(loss, ref, atol=1e-5, rtol=1e-5), (loss, ref)

    # Also exercise reduction=False path against the reference per-sample loss.
    per = jax.block_until_ready(
        cross_entropy_label_smooth(logits, targets, NUM_CLASSES, EPSILON,
                                   reduction=False))
    log_probs = jax.nn.log_softmax(logits, axis=1)
    one_hot = jax.nn.one_hot(targets, NUM_CLASSES, dtype=jnp.float32)
    smoothed = (1.0 - EPSILON) * one_hot + EPSILON / NUM_CLASSES
    ref_per = jnp.sum(-smoothed * log_probs, axis=1)
    assert jnp.allclose(per, ref_per, atol=1e-5, rtol=1e-5), (per, ref_per)

    print("KERNEL_OK")
</pallas_src>

<mosaic_0001>
module attributes {stable_mosaic.version = 11 : i64} {
  func.func @kernel(%arg0: i32, %arg1: memref<8x32xf32, #tpu.memory_space<vmem>>, %arg2: memref<8x1xi32, #tpu.memory_space<vmem>>, %arg3: memref<8x1xf32, #tpu.memory_space<vmem>>) attributes {dimension_semantics = [#tpu.dimension_semantics<parallel>], iteration_bounds = array<i64: 1>, scalar_prefetch = 0 : i64, scratch_operands = 0 : i64, tpu.core_type = #tpu.core_type<tc>, window_params = [{transform_indices = @transform_0, window_bounds = array<i64: 8, 32>}, {transform_indices = @transform_1, window_bounds = array<i64: 8, 1>}, {transform_indices = @transform_2, window_bounds = array<i64: 8, 1>}]} {
    %c0 = arith.constant 0 : index
    %c0_0 = arith.constant 0 : index
    %0 = vector.load %arg1[%c0, %c0_0] : memref<8x32xf32, #tpu.memory_space<vmem>>, vector<8x32xf32>
    %c0_1 = arith.constant 0 : index
    %c0_2 = arith.constant 0 : index
    %1 = vector.load %arg2[%c0_1, %c0_2] : memref<8x1xi32, #tpu.memory_space<vmem>>, vector<8x1xi32>
    %cst = arith.constant dense<0xFF800000> : vector<8xf32>
    %2 = vector.multi_reduction <maximumf>, %0, %cst [1] : vector<8x32xf32> to vector<8xf32>
    %3 = vector.shape_cast %2 : vector<8xf32> to vector<8x1xf32>
    %4 = vector.broadcast %3 : vector<8x1xf32> to vector<8x32xf32>
    %5 = arith.subf %0, %4 : vector<8x32xf32>
    %6 = math.exp %5 : vector<8x32xf32>
    %cst_3 = arith.constant dense<0.000000e+00> : vector<8xf32>
    %7 = vector.multi_reduction <add>, %6, %cst_3 [1] : vector<8x32xf32> to vector<8xf32>
    %8 = vector.shape_cast %7 : vector<8xf32> to vector<8x1xf32>
    %9 = math.log %8 : vector<8x1xf32>
    %10 = tpu.iota {dimensions = array<i32: 1>} : vector<8x32xi32>
    %11 = vector.broadcast %1 : vector<8x1xi32> to vector<8x32xi32>
    %12 = arith.cmpi eq, %10, %11 : vector<8x32xi32>
    %cst_4 = arith.constant 0.000000e+00 : f32
    %13 = vector.broadcast %cst_4 : f32 to vector<8x32xf32>
    %14 = arith.select %12, %5, %13 : vector<8x32xi1>, vector<8x32xf32>
    %cst_5 = arith.constant dense<0.000000e+00> : vector<8xf32>
    %15 = vector.multi_reduction <add>, %14, %cst_5 [1] : vector<8x32xf32> to vector<8xf32>
    %16 = vector.shape_cast %15 : vector<8xf32> to vector<8x1xf32>
    %cst_6 = arith.constant dense<0.000000e+00> : vector<8xf32>
    %17 = vector.multi_reduction <add>, %5, %cst_6 [1] : vector<8x32xf32> to vector<8xf32>
    %18 = vector.shape_cast %17 : vector<8xf32> to vector<8x1xf32>
    %19 = arith.subf %16, %9 : vector<8x1xf32>
    %cst_7 = arith.constant -0.899999976 : f32
    %20 = vector.broadcast %cst_7 : f32 to vector<8x1xf32>
    %21 = arith.mulf %20, %19 : vector<8x1xf32>
    %cst_8 = arith.constant 3.200000e+01 : f32
    %22 = vector.broadcast %cst_8 : f32 to vector<8x1xf32>
    %23 = arith.mulf %22, %9 : vector<8x1xf32>
    %24 = arith.subf %18, %23 : vector<8x1xf32>
    %cst_9 = arith.constant 3.125000e-03 : f32
    %25 = vector.broadcast %cst_9 : f32 to vector<8x1xf32>
    %26 = arith.mulf %25, %24 : vector<8x1xf32>
    %27 = arith.subf %21, %26 : vector<8x1xf32>
    %c0_10 = arith.constant 0 : index
    %c0_11 = arith.constant 0 : index
    %28 = vector.load %arg3[%c0_10, %c0_11] : memref<8x1xf32, #tpu.memory_space<vmem>>, vector<8x1xf32>
    tpu.vector_store %arg3[%c0_10, %c0_11], %27 {strides = array<i32>} : memref<8x1xf32, #tpu.memory_space<vmem>>, vector<8x1xf32>,
    return
  }
  func.func @transform_0(%arg0: i32) -> (i32, i32) {
    %c0_i32 = arith.constant 0 : i32
    %c0_i32_0 = arith.constant 0 : i32
    return %arg0, %c0_i32 : i32, i32
  }
  func.func @transform_1(%arg0: i32) -> (i32, i32) {
    %c0_i32 = arith.constant 0 : i32
    %c0_i32_0 = arith.constant 0 : i32
    return %arg0, %c0_i32 : i32, i32
  }
  func.func @transform_2(%arg0: i32) -> (i32, i32) {
    %c0_i32 = arith.constant 0 : i32
    %c0_i32_0 = arith.constant 0 : i32
    return %arg0, %c0_i32 : i32, i32
  }
}

</mosaic_0001>

<bundles_post_ra>
// kernel: tpu_custom_call.1
= control target key start
LH: loop header
LB: loop body
LE: loop exit
PB: predicated region body
PF: predicated region fallthrough
CT: control target
= control target key end

     0   :  { %vm13_vm0 = vcmask 261120   ;;  %v56_v1 = vmov 0   ;;  %v25_v7 = vlaneseq  ;;  %vm44_vm2 = vcmask 7168   ;;  %s85_s0 = inlined_call_operand.vmem [shape: f32[8,32], index: 0, kind: input, shape index: {}]   ;;  %s86_s1 = inlined_call_operand.vmem [shape: s32[8,1], index: 1, kind: input, shape index: {}]   ;;  %s87_s2 = inlined_call_operand.vmem [shape: f32[8,1], index: 2, kind: output, shape index: {}]  }
   0x1   :  { %v11_v0 = vld [vmem:[%s85_s0] sm:$0xff]  ;;  %51 = vset.pattern.permute.xlu0 %v56_v1 }
   0x2   :  { %v14_v2 = vsel %vm13_vm0, %v11_v0, -inf  ;;  %v12_v3 = vld [vmem:[%s86_s1] sm:$0xff]  ;;  %v26_v8 = vand.u32 127, %v25_v7 }
   0x3   :  { %15 = vmax.xlane.f32.xlu0 %v14_v2 }
  0x19   :  { %28 = vperm.xlu0 %51, %v12_v3  }
  0x8c   :  { %v16_v4 = vpop.xlane.xlu0 %15 }
  0x8d   :  { %v17_v5 = vsub.f32 %v11_v0, %v16_v4 }
  0x8f   :  { %v18_v6 = vmul.f32 1.442695, %v17_v5  ;;  %v35_v14 = vsel %vm13_vm0, %v17_v5, 0.0 }
  0x91   :  { %52 = vpow2.f32 %v18_v6 }
  0x94   :  { %v29_v9 = vpop.permute.xlu0 %28 }
  0x95   :  { %vm30_vm1 = vcmp.eq.s32.totalorder %v26_v8, %v29_v9 }
  0x96   :  { %v31_v12 = vsel %vm30_vm1, %v17_v5, 0.0 }
  0x97   :  { %v32_v13 = vsel %vm13_vm0, %v31_v12, 0.0 }
  0x9e   :  { %v53_v10 = vpop.eup %52 }
  0x9f   :  { %v20_v11 = vsel %vm13_vm0, %v53_v10, 0.0 }
  0xa0   :  { %21 = vadd.xlane.f32.xlu1 %v20_v11 }
  0xa4   :  { %33 = vadd.xlane.f32.xlu1 %v32_v13 }
  0xa8   :  { %36 = vadd.xlane.f32.xlu1 %v35_v14 }
 0x129   :  { %v22_v15 = vpop.xlane.xlu1 %21 }
 0x12a   :  { %54 = vlog2.f32 %v22_v15 }
 0x12d   :  { %v34_v16 = vpop.xlane.xlu1 %33 }
 0x131   :  { %v37_v21 = vpop.xlane.xlu1 %36 }
 0x137   :  { %v55_v17 = vpop.eup %54 }
 0x138   :  { %v24_v18 = vmul.f32 0.6931472, %v55_v17 }
 0x13a   :  { %v38_v19 = vsub.f32 %v34_v16, %v24_v18  ;;  %v40_v20 = vmul.f32 32.0, %v24_v18 }
 0x13c   :  { %v41_v22 = vsub.f32 %v37_v21, %v40_v20  ;;  %v39_v23 = vmul.f32 -0.9, %v38_v19 }
 0x13e   :  { %v42_v24 = vmul.f32 0.003125, %v41_v22 }
 0x140   :  { %v43_v25 = vsub.f32 %v39_v23, %v42_v24 }
 0x142   :  { %45 = vst.msk [vmem:[%s87_s2] sm:$0xff] %vm44_vm2, %v43_v25 }

</bundles_post_ra>
